<compile_context>
chip_gen: v5e
topology: v5e:2x2
jax: 0.10.0
libtpu: 0.0.40
codegen_flags: <defaults>
</compile_context>

<pallas_src>
import math
from functools import partial

import jax
import jax.numpy as jnp
from jax.experimental import pallas as pl
from jax.experimental.pallas import tpu as pltpu


def _ds(start, size, stride=1):
    return pl.ds(start, size) if stride == 1 else pl.ds(start, size, stride)


def _round_up8(v):
    return ((v + 7) // 8) * 8


def _xavier_uniform(key, shape, fan_in, fan_out):
    bound = math.sqrt(6.0 / (fan_in + fan_out))
    return jax.random.uniform(key, shape, jnp.float32, -bound, bound)


def _fused_forward_kernel(*refs, cfgs, NB, neg_slope):
    """Whole-network forward for one batch block.

    Ref order: x, [w_flat, shift] * n_layers, fc_w, fc_b, out,
               pad_ping, pad_pong, prepool (scratch).
    """
    n_layers = len(cfgs)
    x_ref = refs[0]
    layer_params = [(refs[1 + 2 * i], refs[2 + 2 * i]) for i in range(n_layers)]
    idx = 1 + 2 * n_layers
    fcw_ref, fcb_ref, out_ref = refs[idx], refs[idx + 1], refs[idx + 2]
    pad_refs = (refs[idx + 3], refs[idx + 4])
    prepool_ref = refs[idx + 5]

    feat_rows = []  # per-sample lane-dense FC feature rows (last layer only)

    for i, cfg in enumerate(cfgs):
        Cin, Cout, K = cfg["Cin"], cfg["Cout"], cfg["K"]
        stride, dil, pool = cfg["stride"], cfg["dil"], cfg["pool"]
        padding, pad_lead = cfg["padding"], cfg["pad_lead"]
        L_in, L_out = cfg["L_in"], cfg["L_out"]
        read_base = pad_lead - padding
        w_ref, s_ref = layer_params[i]
        cur = pad_refs[i % 2]          # this layer's padded (bf16) input
        nxt = pad_refs[(i + 1) % 2]    # next layer's padded (bf16) input

        # ---- zero the padding halo of this layer's input buffer (the interior
        # of layer 0 comes from the kernel input; later interiors were written
        # by the previous layer's pooling stage).
        if pad_lead > 0:
            cur[:, 0:pad_lead, 0:Cin] = jnp.zeros((NB, pad_lead, Cin),
                                                  jnp.bfloat16)
        if padding > 0:
            cur[:, pad_lead + L_in:pad_lead + L_in + padding, 0:Cin] = (
                jnp.zeros((NB, padding, Cin), jnp.bfloat16))
        if i == 0:
            cur[:, pad_lead:pad_lead + L_in, 0:Cin] = x_ref[...]

        # ---- im2col in registers: K taps lane-concatenated, NB samples
        # sublane-concatenated -> ONE bf16 MXU matmul for the whole block.
        patches = []
        for n in range(NB):
            taps = [cur[n, _ds(read_base + j * dil, L_out, stride), 0:Cin]
                    for j in range(K)]
            patches.append(taps[0] if K == 1 else jnp.concatenate(taps, axis=1))
        pmat = patches[0] if NB == 1 else jnp.concatenate(patches, axis=0)
        z = jnp.dot(pmat, w_ref[...], preferred_element_type=jnp.float32)

        # ---- folded BatchNorm (scale already in the weights) + LeakyReLU, f32.
        z = z + s_ref[...]
        act = jnp.where(z >= 0.0, z, neg_slope * z)

        # ---- MaxPool1d(pool, ceil_mode=True): full windows via strided VMEM
        # reads of the reused pre-pool scratch (robust lowering); the partial
        # ceil-mode tail window is reduced straight from registers.
        nfull, rem = L_out // pool, L_out % pool
        if pool > 1 and nfull > 0:
            prepool_ref[0:NB * L_out, 0:Cout] = act

        for n in range(NB):
            m_full = None
            if nfull > 0:
                if pool == 1:
                    m_full = act[n * L_out:(n + 1) * L_out, :]
                else:
                    m_full = prepool_ref[_ds(n * L_out, nfull, pool), 0:Cout]
                    for p in range(1, pool):
                        m_full = jnp.maximum(
                            m_full,
                            prepool_ref[_ds(n * L_out + p, nfull, pool),
                                        0:Cout])
            m_tail = None
            if rem > 0:
                tail0 = n * L_out + nfull * pool
                m_tail = act[tail0:tail0 + 1, :]
                for p in range(1, rem):
                    m_tail = jnp.maximum(m_tail,
                                         act[tail0 + p:tail0 + p + 1, :])

            if i + 1 < n_layers:
                lead_n = cfgs[i + 1]["pad_lead"]
                if m_full is not None:
                    nxt[n, lead_n:lead_n + nfull, 0:Cout] = (
                        m_full.astype(jnp.bfloat16))
                if m_tail is not None:
                    nxt[n, lead_n + nfull:lead_n + nfull + 1, 0:Cout] = (
                        m_tail.astype(jnp.bfloat16))
            else:
                # last layer: build the lane-dense feature row, order l*C + c
                pieces = ([m_full[w:w + 1, :] for w in range(nfull)]
                          if m_full is not None else [])
                if m_tail is not None:
                    pieces.append(m_tail)
                feat_rows.append(pieces[0] if len(pieces) == 1
                                 else jnp.concatenate(pieces, axis=1))

    # ---- Linear layer: ONE lane-dense matmul, unmasked 128-wide store.
    feat = feat_rows[0] if NB == 1 else jnp.concatenate(feat_rows, axis=0)
    out_ref[...] = (jnp.dot(feat.astype(jnp.bfloat16), fcw_ref[...],
                            preferred_element_type=jnp.float32)
                    + fcb_ref[...])


class CNN1DModelPallas:
    """Pallas-TPU forward-pass equivalent of the PyTorch CNN1DModel."""

    def __init__(self, key, layer_number, input_size, inplanes=8,
                 drop_prob=0.5, filter_size_list=(3,), stride_list=(1,),
                 padding_list=(1,), dilation_list=(1,), max_pooling_list=(2,),
                 regression_label=None, batch_blocks=1):
        self.layer_number = layer_number
        self.input_size = input_size
        # batch_blocks > 1 (with N % batch_blocks == 0 and the per-block batch a
        # multiple of 8) shards grid=(batch_blocks,) across v7x's TensorCores.
        self.batch_blocks = batch_blocks
        self.neg_slope = 0.01           # nn.LeakyReLU() default
        self.o_pad = 128                # lane-dense FC output width
        eps = 1e-5                      # nn.BatchNorm1d default
        # TODO(synk): Dropout(p=0.5) and train-mode BatchNorm batch statistics
        # are not replicated; eval-mode (inference) semantics are used.

        conv_layer_chanls = [inplanes * 2 ** i for i in range(layer_number)]
        self.cfgs, self.params, self._ref_conv = [], [], []
        prev_chanl, L = input_size[0], input_size[1]
        bn_scale = 1.0 / math.sqrt(1.0 + eps)   # eval BN: gamma=1,beta=0,m=0,v=1
        for i, out_ch in enumerate(conv_layer_chanls):
            K = filter_size_list[i]
            stride, padding = stride_list[i], padding_list[i]
            dil, pool = dilation_list[i], max_pooling_list[i]

            key, kw, kb = jax.random.split(key, 3)
            w = _xavier_uniform(kw, (out_ch, prev_chanl, K),
                                fan_in=prev_chanl * K, fan_out=out_ch * K)
            bias_bound = 1.0 / math.sqrt(prev_chanl * K)
            bias = jax.random.uniform(kb, (out_ch,), jnp.float32,
                                      -bias_bound, bias_bound)
            self._ref_conv.append((w, bias))

            # im2col weight layout (row index = j*Cin + c) with the BN scale
            # folded in; only one (bf16) layout is passed to the kernel.
            w_flat = (jnp.transpose(w, (2, 1, 0))
                      .reshape(K * prev_chanl, out_ch) * bn_scale)
            shift = (bias * bn_scale).reshape(1, out_ch)
            self.params.append((w_flat.astype(jnp.bfloat16), shift))

            L_out = (L + 2 * padding - dil * (K - 1) - 1) // stride + 1
            L_pool = -(-L_out // pool)                       # ceil_mode=True
            pad_lead = _round_up8(padding) if padding > 0 else 0
            self.cfgs.append(dict(
                Cin=prev_chanl, Cout=out_ch, K=K, stride=stride,
                padding=padding, dil=dil, pool=pool, L_in=L, L_out=L_out,
                L_pool=L_pool, pad_lead=pad_lead,
                L_buf=pad_lead + L + padding))
            L, prev_chanl = L_pool, out_ch

        self.c_last, self.l_last = prev_chanl, L
        fc_size = prev_chanl * L
        self.n_out = 1 if regression_label is not None else 2
        key, kfc = jax.random.split(key)
        fc_w = _xavier_uniform(kfc, (self.n_out, fc_size),
                               fan_in=fc_size, fan_out=self.n_out)
        fc_b = jnp.full((self.n_out,), 0.01, jnp.float32)
        self._ref_fc = (fc_w, fc_b)
        # Permute the FC weight so it consumes the kernel's in-register feature
        # order (index l*C_last + c, equivalent to PyTorch's C-major flatten
        # index c*L_last + l), zero-padded to 128 output lanes.
        wk = jnp.transpose(fc_w.reshape(self.n_out, self.c_last, self.l_last),
                           (2, 1, 0)).reshape(self.l_last * self.c_last,
                                              self.n_out)
        self.fc_w = jnp.pad(
            wk, ((0, 0), (0, self.o_pad - self.n_out))).astype(jnp.bfloat16)
        self.fc_b = jnp.pad(
            fc_b, (0, self.o_pad - self.n_out)).reshape(1, self.o_pad)

        self._forward = jax.jit(self._forward_impl)

    def _forward_impl(self, x_ncl):
        N = x_ncl.shape[0]
        nblk = 1
        if (self.batch_blocks > 1 and N % self.batch_blocks == 0
                and (N // self.batch_blocks) % 8 == 0):
            nblk = self.batch_blocks
        NB = N // nblk
        L0, C0 = self.cfgs[0]["L_in"], self.cfgs[0]["Cin"]

        # (N, C, L) -> (N, L, C): channels on the TPU lane axis; bf16 for MXU.
        x_nlc = jnp.transpose(x_ncl, (0, 2, 1)).astype(jnp.bfloat16)

        kernel = partial(_fused_forward_kernel, cfgs=self.cfgs, NB=NB,
                         neg_slope=self.neg_slope)

        def full_spec(shape):
            rank = len(shape)
            return pl.BlockSpec(shape, lambda b, _r=rank: (0,) * _r)

        in_specs = [pl.BlockSpec((NB, L0, C0), lambda b: (b, 0, 0))]
        args = [x_nlc]
        for w_flat, shift in self.params:
            in_specs += [full_spec(w_flat.shape), full_spec(shift.shape)]
            args += [w_flat, shift]
        in_specs += [full_spec(self.fc_w.shape), full_spec(self.fc_b.shape)]
        args += [self.fc_w, self.fc_b]

        # Scratch is reused across layers: two ping-pong padded-activation
        # buffers (bf16) + one pre-pool buffer, sized to the per-layer maxima
        # (lane padding to 128 makes the channel max essentially free).
        rows_max = max(c["L_buf"] for c in self.cfgs)
        cin_max = max(c["Cin"] for c in self.cfgs)
        cout_max = max(c["Cout"] for c in self.cfgs)
        prepool_rows = max(NB * c["L_out"] for c in self.cfgs)
        scratch_shapes = [
            pltpu.VMEM((NB, rows_max, cin_max), jnp.bfloat16),
            pltpu.VMEM((NB, rows_max, cin_max), jnp.bfloat16),
            pltpu.VMEM((prepool_rows, cout_max), jnp.float32),
        ]

        out_pad = pl.pallas_call(
            kernel,
            out_shape=jax.ShapeDtypeStruct((N, self.o_pad), jnp.float32),
            grid_spec=pltpu.PrefetchScalarGridSpec(
                num_scalar_prefetch=0,
                grid=(nblk,),
                in_specs=in_specs,
                out_specs=pl.BlockSpec((NB, self.o_pad), lambda b: (b, 0)),
                scratch_shapes=scratch_shapes,
            ),
            compiler_params=pltpu.CompilerParams(
                dimension_semantics=("parallel",),
                # explicit scoped-VMEM budget (fits every generation incl.
                # v7x's 64 MiB); actual usage here is far below it.
                vmem_limit_bytes=48 * 1024 * 1024),
        )(*args)
        return out_pad[:, :self.n_out]

    def forward(self, x_ncl):
        return self._forward(x_ncl)


def _reference_forward(model, x_ncl):
    """Pure-JAX (XLA) reference of the same eval-mode forward pass."""
    eps = 1e-5
    h = x_ncl.astype(jnp.float32)
    for cfg, (w, b) in zip(model.cfgs, model._ref_conv):
        z = jax.lax.conv_general_dilated(
            h, w, window_strides=(cfg["stride"],),
            padding=[(cfg["padding"], cfg["padding"])],
            rhs_dilation=(cfg["dil"],),
            dimension_numbers=("NCH", "OIH", "NCH"))
        z = (z + b[None, :, None]) / jnp.sqrt(1.0 + eps)
        z = jnp.where(z >= 0, z, 0.01 * z)
        pool = cfg["pool"]
        L_out = z.shape[-1]
        L_pool = -(-L_out // pool)
        pad_amt = L_pool * pool - L_out
        if pad_amt:
            z = jnp.pad(z, ((0, 0), (0, 0), (0, pad_amt)),
                        constant_values=-jnp.inf)
        h = z.reshape(z.shape[0], z.shape[1], L_pool, pool).max(axis=-1)
    flat = h.reshape(h.shape[0], -1)
    fc_w, fc_b = model._ref_fc
    return flat @ fc_w.T + fc_b


if __name__ == "__main__":
    key = jax.random.PRNGKey(0)
    k_param, k_x = jax.random.split(key)

    layer_number = 2
    input_size = (6, 16)   # Conv1d input: 6 channels, length 16
    model = CNN1DModelPallas(
        k_param, layer_number, input_size, inplanes=8,
        filter_size_list=(3, 3), stride_list=(1, 1), padding_list=(1, 1),
        dilation_list=(1, 1), max_pooling_list=(2, 2), regression_label=None)

    x = jax.random.normal(k_x, (2, input_size[0], input_size[1]), jnp.float32)
    out = jax.block_until_ready(model.forward(x))
    assert out.shape == (2, 2), out.shape

    ref = jax.block_until_ready(_reference_forward(model, x))
    err = float(jnp.max(jnp.abs(out - ref)))
    assert err < 0.15, f"max |pallas - reference| = {err}"
    print("KERNEL_OK")
</pallas_src>

<mosaic_0001>
module attributes {stable_mosaic.version = 11 : i64} {
  func.func @_fused_forward_kernel(%arg0: i32, %arg1: memref<2x16x6xbf16, #tpu.memory_space<vmem>>, %arg2: memref<18x8xbf16, #tpu.memory_space<vmem>>, %arg3: memref<1x8xf32, #tpu.memory_space<vmem>>, %arg4: memref<24x16xbf16, #tpu.memory_space<vmem>>, %arg5: memref<1x16xf32, #tpu.memory_space<vmem>>, %arg6: memref<64x128xbf16, #tpu.memory_space<vmem>>, %arg7: memref<1x128xf32, #tpu.memory_space<vmem>>, %arg8: memref<2x128xf32, #tpu.memory_space<vmem>>, %arg9: memref<2x25x8xbf16, #tpu.memory_space<vmem>>, %arg10: memref<2x25x8xbf16, #tpu.memory_space<vmem>>, %arg11: memref<32x16xf32, #tpu.memory_space<vmem>>) attributes {dimension_semantics = [#tpu.dimension_semantics<parallel>], iteration_bounds = array<i64: 1>, scalar_prefetch = 0 : i64, scratch_operands = 3 : i64, tpu.core_type = #tpu.core_type<tc>, window_params = [{transform_indices = @transform_0, window_bounds = array<i64: 2, 16, 6>}, {pipeline_mode = #tpu.pipeline_mode<synchronous>, transform_indices = @transform_1, window_bounds = array<i64: 18, 8>}, {pipeline_mode = #tpu.pipeline_mode<synchronous>, transform_indices = @transform_2, window_bounds = array<i64: 1, 8>}, {pipeline_mode = #tpu.pipeline_mode<synchronous>, transform_indices = @transform_3, window_bounds = array<i64: 24, 16>}, {pipeline_mode = #tpu.pipeline_mode<synchronous>, transform_indices = @transform_4, window_bounds = array<i64: 1, 16>}, {pipeline_mode = #tpu.pipeline_mode<synchronous>, transform_indices = @transform_5, window_bounds = array<i64: 64, 128>}, {pipeline_mode = #tpu.pipeline_mode<synchronous>, transform_indices = @transform_6, window_bounds = array<i64: 1, 128>}, {transform_indices = @transform_7, window_bounds = array<i64: 2, 128>}]} {
    %cst = arith.constant 0.000000e+00 : bf16
    %0 = vector.broadcast %cst : bf16 to vector<2x8x6xbf16>
    %c0 = arith.constant 0 : index
    %c0_0 = arith.constant 0 : index
    %c0_1 = arith.constant 0 : index
    %1 = vector.load %arg9[%c0, %c0_0, %c0_1] : memref<2x25x8xbf16, #tpu.memory_space<vmem>>, vector<2x8x6xbf16>
    tpu.vector_store %arg9[%c0, %c0_0, %c0_1], %0 {strides = array<i32>} : memref<2x25x8xbf16, #tpu.memory_space<vmem>>, vector<2x8x6xbf16>,
    %cst_2 = arith.constant 0.000000e+00 : bf16
    %2 = vector.broadcast %cst_2 : bf16 to vector<2x1x6xbf16>
    %c0_3 = arith.constant 0 : index
    %c24 = arith.constant 24 : index
    %c0_4 = arith.constant 0 : index
    %3 = vector.load %arg9[%c0_3, %c24, %c0_4] : memref<2x25x8xbf16, #tpu.memory_space<vmem>>, vector<2x1x6xbf16>
    tpu.vector_store %arg9[%c0_3, %c24, %c0_4], %2 {strides = array<i32>} : memref<2x25x8xbf16, #tpu.memory_space<vmem>>, vector<2x1x6xbf16>,
    %c0_5 = arith.constant 0 : index
    %c0_6 = arith.constant 0 : index
    %c0_7 = arith.constant 0 : index
    %4 = vector.load %arg1[%c0_5, %c0_6, %c0_7] : memref<2x16x6xbf16, #tpu.memory_space<vmem>>, vector<2x16x6xbf16>
    %c0_8 = arith.constant 0 : index
    %c8 = arith.constant 8 : index
    %c0_9 = arith.constant 0 : index
    %5 = vector.load %arg9[%c0_8, %c8, %c0_9] : memref<2x25x8xbf16, #tpu.memory_space<vmem>>, vector<2x16x6xbf16>
    tpu.vector_store %arg9[%c0_8, %c8, %c0_9], %4 {strides = array<i32>} : memref<2x25x8xbf16, #tpu.memory_space<vmem>>, vector<2x16x6xbf16>,
    %c0_10 = arith.constant 0 : index
    %c7 = arith.constant 7 : index
    %c0_11 = arith.constant 0 : index
    %6 = vector.load %arg9[%c0_10, %c7, %c0_11] : memref<2x25x8xbf16, #tpu.memory_space<vmem>>, vector<1x16x6xbf16>
    %7 = vector.shape_cast %6 : vector<1x16x6xbf16> to vector<16x6xbf16>
    %c0_12 = arith.constant 0 : index
    %c8_13 = arith.constant 8 : index
    %c0_14 = arith.constant 0 : index
    %8 = vector.load %arg9[%c0_12, %c8_13, %c0_14] : memref<2x25x8xbf16, #tpu.memory_space<vmem>>, vector<1x16x6xbf16>
    %9 = vector.shape_cast %8 : vector<1x16x6xbf16> to vector<16x6xbf16>
    %c0_15 = arith.constant 0 : index
    %c9 = arith.constant 9 : index
    %c0_16 = arith.constant 0 : index
    %10 = vector.load %arg9[%c0_15, %c9, %c0_16] : memref<2x25x8xbf16, #tpu.memory_space<vmem>>, vector<1x16x6xbf16>
    %11 = vector.shape_cast %10 : vector<1x16x6xbf16> to vector<16x6xbf16>
    %12 = tpu.concatenate %7, %9, %11 in 1 : vector<16x6xbf16>, vector<16x6xbf16>, vector<16x6xbf16> -> vector<16x18xbf16>
    %c1 = arith.constant 1 : index
    %c7_17 = arith.constant 7 : index
    %c0_18 = arith.constant 0 : index
    %13 = vector.load %arg9[%c1, %c7_17, %c0_18] : memref<2x25x8xbf16, #tpu.memory_space<vmem>>, vector<1x16x6xbf16>
    %14 = vector.shape_cast %13 : vector<1x16x6xbf16> to vector<16x6xbf16>
    %c1_19 = arith.constant 1 : index
    %c8_20 = arith.constant 8 : index
    %c0_21 = arith.constant 0 : index
    %15 = vector.load %arg9[%c1_19, %c8_20, %c0_21] : memref<2x25x8xbf16, #tpu.memory_space<vmem>>, vector<1x16x6xbf16>
    %16 = vector.shape_cast %15 : vector<1x16x6xbf16> to vector<16x6xbf16>
    %c1_22 = arith.constant 1 : index
    %c9_23 = arith.constant 9 : index
    %c0_24 = arith.constant 0 : index
    %17 = vector.load %arg9[%c1_22, %c9_23, %c0_24] : memref<2x25x8xbf16, #tpu.memory_space<vmem>>, vector<1x16x6xbf16>
    %18 = vector.shape_cast %17 : vector<1x16x6xbf16> to vector<16x6xbf16>
    %19 = tpu.concatenate %14, %16, %18 in 1 : vector<16x6xbf16>, vector<16x6xbf16>, vector<16x6xbf16> -> vector<16x18xbf16>
    %20 = tpu.concatenate %12, %19 in 0 : vector<16x18xbf16>, vector<16x18xbf16> -> vector<32x18xbf16>
    %c0_25 = arith.constant 0 : index
    %c0_26 = arith.constant 0 : index
    %21 = vector.load %arg2[%c0_25, %c0_26] : memref<18x8xbf16, #tpu.memory_space<vmem>>, vector<18x8xbf16>
    %cst_27 = arith.constant dense<0.000000e+00> : vector<32x8xf32>
    %22 = tpu.matmul %20, %21, %cst_27 {dimension_numbers = #tpu.dot_dimension_numbers<[1], [0], [0], [1], [0, 0, 1, 1], [], []>} : vector<32x18xbf16>, vector<18x8xbf16>, vector<32x8xf32> -> vector<32x8xf32>
    %c0_28 = arith.constant 0 : index
    %c0_29 = arith.constant 0 : index
    %23 = vector.load %arg3[%c0_28, %c0_29] : memref<1x8xf32, #tpu.memory_space<vmem>>, vector<1x8xf32>
    %24 = vector.broadcast %23 : vector<1x8xf32> to vector<32x8xf32>
    %25 = arith.addf %22, %24 : vector<32x8xf32>
    %cst_30 = arith.constant 0.000000e+00 : f32
    %26 = vector.broadcast %cst_30 : f32 to vector<32x8xf32>
    %27 = arith.cmpf oge, %25, %26 : vector<32x8xf32>
    %cst_31 = arith.constant 0.00999999977 : f32
    %28 = vector.broadcast %cst_31 : f32 to vector<32x8xf32>
    %29 = arith.mulf %28, %25 : vector<32x8xf32>
    %30 = arith.select %27, %25, %29 : vector<32x8xi1>, vector<32x8xf32>
    %c0_32 = arith.constant 0 : index
    %c0_33 = arith.constant 0 : index
    %31 = vector.load %arg11[%c0_32, %c0_33] : memref<32x16xf32, #tpu.memory_space<vmem>>, vector<32x8xf32>
    tpu.vector_store %arg11[%c0_32, %c0_33], %30 {strides = array<i32>} : memref<32x16xf32, #tpu.memory_space<vmem>>, vector<32x8xf32>,
    %c0_34 = arith.constant 0 : index
    %c0_35 = arith.constant 0 : index
    %32 = tpu.strided_load %arg11[%c0_34, %c0_35] {strides = array<i32: 2, 1>} : memref<32x16xf32, #tpu.memory_space<vmem>>, vector<8x8xf32>
    %c1_36 = arith.constant 1 : index
    %c0_37 = arith.constant 0 : index
    %33 = tpu.strided_load %arg11[%c1_36, %c0_37] {strides = array<i32: 2, 1>} : memref<32x16xf32, #tpu.memory_space<vmem>>, vector<8x8xf32>
    %34 = arith.maximumf %32, %33 : vector<8x8xf32>
    %35 = arith.truncf %34 : vector<8x8xf32> to vector<8x8xbf16>
    %c0_38 = arith.constant 0 : index
    %c8_39 = arith.constant 8 : index
    %c0_40 = arith.constant 0 : index
    %36 = vector.load %arg10[%c0_38, %c8_39, %c0_40] : memref<2x25x8xbf16, #tpu.memory_space<vmem>>, vector<1x8x8xbf16>
    %37 = vector.shape_cast %36 : vector<1x8x8xbf16> to vector<8x8xbf16>
    %38 = vector.shape_cast %35 : vector<8x8xbf16> to vector<1x8x8xbf16>
    tpu.vector_store %arg10[%c0_38, %c8_39, %c0_40], %38 {strides = array<i32>} : memref<2x25x8xbf16, #tpu.memory_space<vmem>>, vector<1x8x8xbf16>,
    %c16 = arith.constant 16 : index
    %c0_41 = arith.constant 0 : index
    %39 = tpu.strided_load %arg11[%c16, %c0_41] {strides = array<i32: 2, 1>} : memref<32x16xf32, #tpu.memory_space<vmem>>, vector<8x8xf32>
    %c17 = arith.constant 17 : index
    %c0_42 = arith.constant 0 : index
    %40 = tpu.strided_load %arg11[%c17, %c0_42] {strides = array<i32: 2, 1>} : memref<32x16xf32, #tpu.memory_space<vmem>>, vector<8x8xf32>
    %41 = arith.maximumf %39, %40 : vector<8x8xf32>
    %42 = arith.truncf %41 : vector<8x8xf32> to vector<8x8xbf16>
    %c1_43 = arith.constant 1 : index
    %c8_44 = arith.constant 8 : index
    %c0_45 = arith.constant 0 : index
    %43 = vector.load %arg10[%c1_43, %c8_44, %c0_45] : memref<2x25x8xbf16, #tpu.memory_space<vmem>>, vector<1x8x8xbf16>
    %44 = vector.shape_cast %43 : vector<1x8x8xbf16> to vector<8x8xbf16>
    %45 = vector.shape_cast %42 : vector<8x8xbf16> to vector<1x8x8xbf16>
    tpu.vector_store %arg10[%c1_43, %c8_44, %c0_45], %45 {strides = array<i32>} : memref<2x25x8xbf16, #tpu.memory_space<vmem>>, vector<1x8x8xbf16>,
    %cst_46 = arith.constant 0.000000e+00 : bf16
    %46 = vector.broadcast %cst_46 : bf16 to vector<2x8x8xbf16>
    %c0_47 = arith.constant 0 : index
    %c0_48 = arith.constant 0 : index
    %c0_49 = arith.constant 0 : index
    %47 = vector.load %arg10[%c0_47, %c0_48, %c0_49] : memref<2x25x8xbf16, #tpu.memory_space<vmem>>, vector<2x8x8xbf16>
    tpu.vector_store %arg10[%c0_47, %c0_48, %c0_49], %46 {strides = array<i32>} : memref<2x25x8xbf16, #tpu.memory_space<vmem>>, vector<2x8x8xbf16>,
    %cst_50 = arith.constant 0.000000e+00 : bf16
    %48 = vector.broadcast %cst_50 : bf16 to vector<2x1x8xbf16>
    %c0_51 = arith.constant 0 : index
    %c16_52 = arith.constant 16 : index
    %c0_53 = arith.constant 0 : index
    %49 = vector.load %arg10[%c0_51, %c16_52, %c0_53] : memref<2x25x8xbf16, #tpu.memory_space<vmem>>, vector<2x1x8xbf16>
    tpu.vector_store %arg10[%c0_51, %c16_52, %c0_53], %48 {strides = array<i32>} : memref<2x25x8xbf16, #tpu.memory_space<vmem>>, vector<2x1x8xbf16>,
    %c0_54 = arith.constant 0 : index
    %c7_55 = arith.constant 7 : index
    %c0_56 = arith.constant 0 : index
    %50 = vector.load %arg10[%c0_54, %c7_55, %c0_56] : memref<2x25x8xbf16, #tpu.memory_space<vmem>>, vector<1x8x8xbf16>
    %51 = vector.shape_cast %50 : vector<1x8x8xbf16> to vector<8x8xbf16>
    %c0_57 = arith.constant 0 : index
    %c8_58 = arith.constant 8 : index
    %c0_59 = arith.constant 0 : index
    %52 = vector.load %arg10[%c0_57, %c8_58, %c0_59] : memref<2x25x8xbf16, #tpu.memory_space<vmem>>, vector<1x8x8xbf16>
    %53 = vector.shape_cast %52 : vector<1x8x8xbf16> to vector<8x8xbf16>
    %c0_60 = arith.constant 0 : index
    %c9_61 = arith.constant 9 : index
    %c0_62 = arith.constant 0 : index
    %54 = vector.load %arg10[%c0_60, %c9_61, %c0_62] : memref<2x25x8xbf16, #tpu.memory_space<vmem>>, vector<1x8x8xbf16>
    %55 = vector.shape_cast %54 : vector<1x8x8xbf16> to vector<8x8xbf16>
    %56 = tpu.concatenate %51, %53, %55 in 1 : vector<8x8xbf16>, vector<8x8xbf16>, vector<8x8xbf16> -> vector<8x24xbf16>
    %c1_63 = arith.constant 1 : index
    %c7_64 = arith.constant 7 : index
    %c0_65 = arith.constant 0 : index
    %57 = vector.load %arg10[%c1_63, %c7_64, %c0_65] : memref<2x25x8xbf16, #tpu.memory_space<vmem>>, vector<1x8x8xbf16>
    %58 = vector.shape_cast %57 : vector<1x8x8xbf16> to vector<8x8xbf16>
    %c1_66 = arith.constant 1 : index
    %c8_67 = arith.constant 8 : index
    %c0_68 = arith.constant 0 : index
    %59 = vector.load %arg10[%c1_66, %c8_67, %c0_68] : memref<2x25x8xbf16, #tpu.memory_space<vmem>>, vector<1x8x8xbf16>
    %60 = vector.shape_cast %59 : vector<1x8x8xbf16> to vector<8x8xbf16>
    %c1_69 = arith.constant 1 : index
    %c9_70 = arith.constant 9 : index
    %c0_71 = arith.constant 0 : index
    %61 = vector.load %arg10[%c1_69, %c9_70, %c0_71] : memref<2x25x8xbf16, #tpu.memory_space<vmem>>, vector<1x8x8xbf16>
    %62 = vector.shape_cast %61 : vector<1x8x8xbf16> to vector<8x8xbf16>
    %63 = tpu.concatenate %58, %60, %62 in 1 : vector<8x8xbf16>, vector<8x8xbf16>, vector<8x8xbf16> -> vector<8x24xbf16>
    %64 = tpu.concatenate %56, %63 in 0 : vector<8x24xbf16>, vector<8x24xbf16> -> vector<16x24xbf16>
    %c0_72 = arith.constant 0 : index
    %c0_73 = arith.constant 0 : index
    %65 = vector.load %arg4[%c0_72, %c0_73] : memref<24x16xbf16, #tpu.memory_space<vmem>>, vector<24x16xbf16>
    %cst_74 = arith.constant dense<0.000000e+00> : vector<16x16xf32>
    %66 = tpu.matmul %64, %65, %cst_74 {dimension_numbers = #tpu.dot_dimension_numbers<[1], [0], [0], [1], [0, 0, 1, 1], [], []>} : vector<16x24xbf16>, vector<24x16xbf16>, vector<16x16xf32> -> vector<16x16xf32>
    %c0_75 = arith.constant 0 : index
    %c0_76 = arith.constant 0 : index
    %67 = vector.load %arg5[%c0_75, %c0_76] : memref<1x16xf32, #tpu.memory_space<vmem>>, vector<1x16xf32>
    %68 = vector.broadcast %67 : vector<1x16xf32> to vector<16x16xf32>
    %69 = arith.addf %66, %68 : vector<16x16xf32>
    %cst_77 = arith.constant 0.000000e+00 : f32
    %70 = vector.broadcast %cst_77 : f32 to vector<16x16xf32>
    %71 = arith.cmpf oge, %69, %70 : vector<16x16xf32>
    %cst_78 = arith.constant 0.00999999977 : f32
    %72 = vector.broadcast %cst_78 : f32 to vector<16x16xf32>
    %73 = arith.mulf %72, %69 : vector<16x16xf32>
    %74 = arith.select %71, %69, %73 : vector<16x16xi1>, vector<16x16xf32>
    %c0_79 = arith.constant 0 : index
    %c0_80 = arith.constant 0 : index
    %75 = vector.load %arg11[%c0_79, %c0_80] : memref<32x16xf32, #tpu.memory_space<vmem>>, vector<16x16xf32>
    tpu.vector_store %arg11[%c0_79, %c0_80], %74 {strides = array<i32>} : memref<32x16xf32, #tpu.memory_space<vmem>>, vector<16x16xf32>,
    %c0_81 = arith.constant 0 : index
    %c0_82 = arith.constant 0 : index
    %76 = tpu.strided_load %arg11[%c0_81, %c0_82] {strides = array<i32: 2, 1>} : memref<32x16xf32, #tpu.memory_space<vmem>>, vector<4x16xf32>
    %c1_83 = arith.constant 1 : index
    %c0_84 = arith.constant 0 : index
    %77 = tpu.strided_load %arg11[%c1_83, %c0_84] {strides = array<i32: 2, 1>} : memref<32x16xf32, #tpu.memory_space<vmem>>, vector<4x16xf32>
    %78 = arith.maximumf %76, %77 : vector<4x16xf32>
    %79 = vector.extract_strided_slice %78 {offsets = [0, 0], sizes = [1, 16], strides = [1, 1]} : vector<4x16xf32> to vector<1x16xf32>
    %80 = vector.extract_strided_slice %78 {offsets = [1, 0], sizes = [1, 16], strides = [1, 1]} : vector<4x16xf32> to vector<1x16xf32>
    %81 = vector.extract_strided_slice %78 {offsets = [2, 0], sizes = [1, 16], strides = [1, 1]} : vector<4x16xf32> to vector<1x16xf32>
    %82 = vector.extract_strided_slice %78 {offsets = [3, 0], sizes = [1, 16], strides = [1, 1]} : vector<4x16xf32> to vector<1x16xf32>
    %83 = tpu.concatenate %79, %80, %81, %82 in 1 : vector<1x16xf32>, vector<1x16xf32>, vector<1x16xf32>, vector<1x16xf32> -> vector<1x64xf32>
    %c8_85 = arith.constant 8 : index
    %c0_86 = arith.constant 0 : index
    %84 = tpu.strided_load %arg11[%c8_85, %c0_86] {strides = array<i32: 2, 1>} : memref<32x16xf32, #tpu.memory_space<vmem>>, vector<4x16xf32>
    %c9_87 = arith.constant 9 : index
    %c0_88 = arith.constant 0 : index
    %85 = tpu.strided_load %arg11[%c9_87, %c0_88] {strides = array<i32: 2, 1>} : memref<32x16xf32, #tpu.memory_space<vmem>>, vector<4x16xf32>
    %86 = arith.maximumf %84, %85 : vector<4x16xf32>
    %87 = vector.extract_strided_slice %86 {offsets = [0, 0], sizes = [1, 16], strides = [1, 1]} : vector<4x16xf32> to vector<1x16xf32>
    %88 = vector.extract_strided_slice %86 {offsets = [1, 0], sizes = [1, 16], strides = [1, 1]} : vector<4x16xf32> to vector<1x16xf32>
    %89 = vector.extract_strided_slice %86 {offsets = [2, 0], sizes = [1, 16], strides = [1, 1]} : vector<4x16xf32> to vector<1x16xf32>
    %90 = vector.extract_strided_slice %86 {offsets = [3, 0], sizes = [1, 16], strides = [1, 1]} : vector<4x16xf32> to vector<1x16xf32>
    %91 = tpu.concatenate %87, %88, %89, %90 in 1 : vector<1x16xf32>, vector<1x16xf32>, vector<1x16xf32>, vector<1x16xf32> -> vector<1x64xf32>
    %92 = tpu.concatenate %83, %91 in 0 : vector<1x64xf32>, vector<1x64xf32> -> vector<2x64xf32>
    %93 = arith.truncf %92 : vector<2x64xf32> to vector<2x64xbf16>
    %c0_89 = arith.constant 0 : index
    %c0_90 = arith.constant 0 : index
    %94 = vector.load %arg6[%c0_89, %c0_90] : memref<64x128xbf16, #tpu.memory_space<vmem>>, vector<64x128xbf16>
    %cst_91 = arith.constant dense<0.000000e+00> : vector<2x128xf32>
    %95 = tpu.matmul %93, %94, %cst_91 {dimension_numbers = #tpu.dot_dimension_numbers<[1], [0], [0], [1], [0, 0, 1, 1], [], []>} : vector<2x64xbf16>, vector<64x128xbf16>, vector<2x128xf32> -> vector<2x128xf32>
    %c0_92 = arith.constant 0 : index
    %c0_93 = arith.constant 0 : index
    %96 = vector.load %arg7[%c0_92, %c0_93] : memref<1x128xf32, #tpu.memory_space<vmem>>, vector<1x128xf32>
    %97 = vector.broadcast %96 : vector<1x128xf32> to vector<2x128xf32>
    %98 = arith.addf %95, %97 : vector<2x128xf32>
    %c0_94 = arith.constant 0 : index
    %c0_95 = arith.constant 0 : index
    %99 = vector.load %arg8[%c0_94, %c0_95] : memref<2x128xf32, #tpu.memory_space<vmem>>, vector<2x128xf32>
    tpu.vector_store %arg8[%c0_94, %c0_95], %98 {strides = array<i32>} : memref<2x128xf32, #tpu.memory_space<vmem>>, vector<2x128xf32>,
    return
  }
  func.func @transform_0(%arg0: i32) -> (i32, i32, i32) {
    %c0_i32 = arith.constant 0 : i32
    %c0_i32_0 = arith.constant 0 : i32
    %c0_i32_1 = arith.constant 0 : i32
    return %arg0, %c0_i32, %c0_i32_0 : i32, i32, i32
  }
  func.func @transform_1(%arg0: i32) -> (i32, i32) {
    %c0_i32 = arith.constant 0 : i32
    %c0_i32_0 = arith.constant 0 : i32
    %c0_i32_1 = arith.constant 0 : i32
    return %c0_i32, %c0_i32_0 : i32, i32
  }
  func.func @transform_2(%arg0: i32) -> (i32, i32) {
    %c0_i32 = arith.constant 0 : i32
    %c0_i32_0 = arith.constant 0 : i32
    %c0_i32_1 = arith.constant 0 : i32
    return %c0_i32, %c0_i32_0 : i32, i32
  }
  func.func @transform_3(%arg0: i32) -> (i32, i32) {
    %c0_i32 = arith.constant 0 : i32
    %c0_i32_0 = arith.constant 0 : i32
    %c0_i32_1 = arith.constant 0 : i32
    return %c0_i32, %c0_i32_0 : i32, i32
  }
  func.func @transform_4(%arg0: i32) -> (i32, i32) {
    %c0_i32 = arith.constant 0 : i32
    %c0_i32_0 = arith.constant 0 : i32
    %c0_i32_1 = arith.constant 0 : i32
    return %c0_i32, %c0_i32_0 : i32, i32
  }
  func.func @transform_5(%arg0: i32) -> (i32, i32) {
    %c0_i32 = arith.constant 0 : i32
    %c0_i32_0 = arith.constant 0 : i32
    %c0_i32_1 = arith.constant 0 : i32
    return %c0_i32, %c0_i32_0 : i32, i32
  }
  func.func @transform_6(%arg0: i32) -> (i32, i32) {
    %c0_i32 = arith.constant 0 : i32
    %c0_i32_0 = arith.constant 0 : i32
    %c0_i32_1 = arith.constant 0 : i32
    return %c0_i32, %c0_i32_0 : i32, i32
  }
  func.func @transform_7(%arg0: i32) -> (i32, i32) {
    %c0_i32 = arith.constant 0 : i32
    %c0_i32_0 = arith.constant 0 : i32
    return %arg0, %c0_i32 : i32, i32
  }
}

</mosaic_0001>

<bundles_post_ra>
// kernel: _forward_impl.1
= control target key start
LH: loop header
LB: loop body
LE: loop exit
PB: predicated region body
PF: predicated region fallthrough
CT: control target
= control target key end

     0   :  { %12 = vsyncpa [#allocation6], 0  ;;  %s862_s0 = inlined_call_operand.vmem [shape: bf16[2,16,6], index: 0, kind: input, shape index: {}]   ;;  %s863_s1 = inlined_call_operand.hbm [shape: bf16[18,8], index: 1, kind: input, shape index: {}]   ;;  %s864_s2 = inlined_call_operand.hbm [shape: f32[1,8], index: 2, kind: input, shape index: {}]   ;;  %s865_s3 = inlined_call_operand.vmem [shape: bf16[24,16], index: 3, kind: input, shape index: {}]   ;;  %s866_s4 = inlined_call_operand.hbm [shape: f32[1,16], index: 4, kind: input, shape index: {}]   ;;  %s867_s5 = inlined_call_operand.vmem [shape: bf16[64,128], index: 5, kind: input, shape index: {}]   ;;  %s868_s6 = inlined_call_operand.vmem [shape: f32[1,128], index: 6, kind: input, shape index: {}]   ;;  %s869_s7 = inlined_call_operand.hbm [shape: f32[2,128], index: 7, kind: output, shape index: {}]  }
   0x1   :  { %13 = vsyncpa [#allocation9], 0  ;;  %s35_s26 = sshll.u32 %s864_s2, 4  ;;  %s36_s26 = int_to_ptr.hbm [resolvable:$true] %s35_s26 }
   0x2   :  { %14 = vsyncpa [#allocation7], 0  ;;  %s718_s27 = smov [#allocation8]   ;;  %s21_s8 = sshll.u32 %s863_s1, 4  ;;  %s22_s8 = int_to_ptr.hbm [resolvable:$true] %s21_s8 }
   0x3   :  { %s37_s28 = sshll.u32 %s718_s27, 4  ;;  %s719_s9 = smov [#allocation5]   ;;  %s38_s28 = int_to_ptr.vmem [resolvable:$true] %s37_s28 }
   0x4   :  { %40 = dma.hbm_to_vmem [thread:$0]  %s36_s26, 16, %s38_s28, [#allocation9]  }
   0x5   :  { %s23_s10 = sshll.u32 %s719_s9, 4  ;;  %s720_s11 = smov 64   ;;  %s24_s10 = int_to_ptr.vmem [resolvable:$true] %s23_s10 }
   0x6   :  { %s721_s12 = smov 4   ;;  %s48_s2 = sshll.u32 %s866_s4, 4  ;;  %s49_s2 = int_to_ptr.hbm [resolvable:$true] %s48_s2 }
   0x7   :  { %29 = dma.hbm_to_vmem [thread:$0]  %s22_s8, 192, %s24_s10, [#allocation6], %s720_s11, %s720_s11, %s721_s12  }
   0x8   :  { %s722_s15 = smov [#allocation10]  }
   0x9   :  { %s50_s16 = sshll.u32 %s722_s15, 4  ;;  %s51_s16 = int_to_ptr.vmem [resolvable:$true] %s50_s16 }
   0xa   :  { %53 = dma.hbm_to_vmem [thread:$0]  %s49_s2, 16, %s51_s16, [#allocation9]  }
   0xb   :  { %710 = dma.done.wait [#allocation6], 192  }
   0xc   :  { %711 = vsyncadd [#allocation6], 4294967104 }
   0xd   :  { %712 = dma.done.wait [#allocation9], 32  }
   0xe   :  { %713 = vsyncadd [#allocation9], 4294967264  ;;  %vm74_vm0 = vcmask 40960   ;;  %vm75_vm1 = vsmask.f32 256  ;;  %vm71_vm2 = vcmask 44032  }
   0xf   :  { %vm76_vm3 = vmand %vm74_vm0, %vm75_vm1  ;;  %v80_v0 = vld [vmem:[#allocation2 + $0x1c] sm:$0x1]  ;;  %v85_v1 = vld [vmem:[%s862_s0 + $0x8] sm:$0xf]  ;;  %vm117_vm4 = vcmask 1042432   ;;  %s724_s23 = smov 6  }
  0x10   :  { %v86_v2 = vld [vmem:[%s862_s0 + $0xc] sm:$0xf]  ;;  %v81_v3 = vsel %vm76_vm3, 0, %v80_v0  ;;  %89 = vst.msk [vmem:[#allocation2 + $0x14] sm:$0xf] %vm71_vm2, %v85_v1  ;;  %v725_v36 = vmov 0  }
  0x11   :  { %v83_v4 = vld [vmem:[%s862_s0] sm:$0xf]  ;;  %82 = vst [vmem:[#allocation2 + $0x1c] sm:$0x1] %v81_v3  ;;  %v84_v5 = vld [vmem:[%s862_s0 + $0x4] sm:$0xf] }
  0x12   :  { %v77_v6 = vld [vmem:[#allocation2 + $0xc] sm:$0x1]  ;;  %90 = vst.msk [vmem:[#allocation2 + $0x18] sm:$0xf] %vm71_vm2, %v86_v2  ;;  %s723_s0 = smov 12   ;;  %vm233_vm5 = vcmask 1040384  }
  0x13   :  { %v78_v7 = vsel %vm76_vm3, 0, %v77_v6  ;;  %87 = vst.msk [vmem:[#allocation2 + $0x4] sm:$0xf] %vm71_vm2, %v83_v4  ;;  %v212_v37 = vld [vmem:[#allocation5 + $0x8] sm:$0x1]  ;;  %v567_v41 = vld [vmem:[#allocation5] sm:$0xff] }
  0x14   :  { %88 = vst.msk [vmem:[#allocation2 + $0x8] sm:$0xf] %vm71_vm2, %v84_v5  ;;  %v222_v38 = vunpack.c.l.b16 %v212_v37  ;;  %vm125_vm6 = vcmask 48128   ;;  %vm131_vm7 = vcmask 97280   ;;  %vm179_vm8 = vsmask.f32 4352 }
  0x15   :  { %79 = vst [vmem:[#allocation2 + $0xc] sm:$0x1] %v78_v7  ;;  %vm226_vm9 = vcmask 146432   ;;  %vm290_vm10 = vcmask 57344   ;;  %vm278_vm12 = vcmask 60416   ;;  %vm268_vm14 = vcmask 64512  }
  0x16   :  { %73 = vst.msk [vmem:[#allocation2 + $0x10] sm:$0xf] %vm71_vm2, %v725_v36  ;;  %v224_v39 = vpack.c.b16 %v222_v38, %v222_v38  ;;  %vm291_vm11 = vmand %vm290_vm10, %vm75_vm1  ;;  %s726_s24 = smov 16   ;;  %s727_s25 = smov 8   ;;  %vm326_vm3 = vcmask 130048   ;;  %vm503_vm10 = vcmask 523264  }
  0x17   :  { %v797_v10 = vld [vmem:[#allocation2 + $0x10] sm:$0xf0]   ;;  %72 = vst.msk [vmem:[#allocation2] sm:$0xf] %vm71_vm2, %v725_v36  ;;  %vm372_vm2 = vcmask 1043456   ;;  %s729_s30 = smov 32  }
  0x18   :  { %v140_v8 = vld [vmem:[#allocation2 + $0x1c] sm:$0x1]  ;;  %v235_v40 = vsel %vm233_vm5, %v224_v39, 0  ;;  %288 = vst.msk [vmem:[#allocation3] sm:$0xf] %vm278_vm12, %v725_v36  ;;  %s730_s16 = smov [#allocation11]  }
  0x19   :  { %v138_v9 = vld [vmem:[#allocation2 + $0x14] sm:$0xff]   ;;  %v161_v11 = vunpack.c.l.b16 %v140_v8  ;;  %243 = vmatpush.bf16.msra.mxu0 %v235_v40  ;;  %573 = vmatpush.bf16.msra.mxu3 %v235_v40  ;;  %289 = vst.msk [vmem:[#allocation3 + $0x10] sm:$0xf] %vm278_vm12, %v725_v36  ;;  %s526_s1 = sshll.u32 %s730_s16, 4  ;;  %s528_s18 = sshll.u32 %s869_s7, 4  ;;  %s527_s1 = int_to_ptr.vmem [resolvable:$true] %s526_s1  ;;  %s529_s18 = int_to_ptr.hbm [resolvable:$true] %s528_s18 }
  0x1a   :  { %v146_v12 = vunpack.c.h.b16 %v138_v9  ;;  %v717_v15 = vld [vmem:[#allocation2] sm:$0xf0]   ;;  %v163_v20 = vrot.slane %v138_v9, 5  ;;  %v151_v21 = vshrl.u32 %v138_v9, 16  ;;  %v154_v22 = vshll.u32 %v138_v9, 16 }
  0x1b   :  { %v162_v13 = vpack.c.b16 %v161_v11, %v161_v11  ;;  %v92_v14 = vld [vmem:[#allocation2 + $0x4] sm:$0xff]  }
  0x1c   :  { %v100_v16 = vunpack.c.h.b16 %v92_v14  ;;  %v94_v17 = vld [vmem:[#allocation2 + $0xc] sm:$0x1]  ;;  %v153_v25 = vrot.slane %v151_v21, 4  ;;  %v156_v26 = vrot.slane %v154_v22, 5  ;;  %v105_v27 = vshrl.u32 %v92_v14, 16 }
  0x1d   :  { %v164_v18 = vrot.slane %v162_v13, 5  ;;  %v115_v19 = vunpack.c.l.b16 %v94_v17  ;;  %v108_v28 = vshll.u32 %v92_v14, 16  ;;  %v118_v29 = vrot.slane %v92_v14, 5  ;;  %244 = vmatpush.bf16.msra.mxu0 %v567_v41  ;;  %574 = vmatpush.bf16.msra.mxu3 %v567_v41  ;;  %v608_v43 = vld [vmem:[#allocation2 + $0x10] sm:$0x8] }
  0x1e   :  { %v157_v30 = vor.u32 %v156_v26, %v153_v25  ;;  %v107_v31 = vrot.slane %v105_v27, 4  ;;  %v612_v44 = vld [vmem:[#allocation2] sm:$0x8]  ;;  %v148_v46 = vpack.c.b16 %v146_v12, %v146_v12  ;;  %v609_v49 = vor.u32 %v797_v10, %v608_v43  ;;  %v603_v22 = vld [vmem:[#allocation8] ss:$0 sm:$0xff] }
  0x1f   :  { %v116_v23 = vpack.c.b16 %v115_v19, %v115_v19  ;;  %v165_v24 = vsel %vm117_vm4, %v163_v20, %v164_v18  ;;  %v110_v32 = vrot.slane %v108_v28, 5  ;;  %121 = vrot.lane.b32.xlu2 %v118_v29, %s723_s0  ;;  %v102_v50 = vpack.c.b16 %v100_v16, %v100_v16  ;;  %v295_v25 = vld [vmem:[#allocation3 + $0x18] sm:$0x1] }
  0x20   :  { %168 = vrot.lane.b32.xlu1 %v165_v24, %s723_s0  ;;  %158 = vrot.lane.b32.xlu0 %v157_v30, %s724_s23  ;;  %v613_v51 = vor.u32 %v717_v15, %v612_v44  ;;  %v296_v26 = vsel %vm291_vm11, 0, %v295_v25 }
  0x21   :  { %v119_v33 = vrot.slane %v116_v23, 5  ;;  %v111_v34 = vor.u32 %v110_v32, %v107_v31  ;;  %297 = vst [vmem:[#allocation3 + $0x18] sm:$0x1] %v296_v26 }
  0x23   :  { %v120_v35 = vsel %vm117_vm4, %v118_v29, %v119_v33  ;;  %vm392_vm4 = vcmask 195584  }
  0x27   :  { %123 = vrot.lane.b32.xlu2 %v120_v35, %s723_s0 }
  0x28   :  { %112 = vrot.lane.b32.xlu1 %v111_v34, %s724_s23  ;;  %166 = vrot.lane.b32.xlu0 %v163_v20, %s723_s0  ;;  %v292_v20 = vld [vmem:[#allocation3 + $0x8] sm:$0x1] }
  0x29   :  { %v293_v21 = vsel %vm291_vm11, 0, %v292_v20 }
  0x2a   :  { %294 = vst [vmem:[#allocation3 + $0x8] sm:$0x1] %v293_v21 }
  0x79   :  { %v122_v42 = vpop.permute.xlu2 %121 }
  0x81   :  { %v124_v53 = vpop.permute.xlu2 %123 }
  0x92   :  { %v169_v45 = vpop.permute.xlu1 %168  ;;  %v159_v47 = vpop.permute.xlu0 %158 }
  0x93   :  { %v174_v48 = vsel %vm125_vm6, %v148_v46, %v159_v47  ;;  %v172_v55 = vsel %vm125_vm6, %v609_v49, %v159_v47 }
  0x94   :  { %v178_v52 = vsel %vm131_vm7, %v174_v48, %v169_v45  ;;  %v300_v45 = vld [vmem:[#allocation3 + $0x8] sm:$0x1] }
  0x95   :  { %v202_v58 = vshrl.u32 %v178_v52, 16  ;;  %v205_v59 = vshll.u32 %v178_v52, 16  ;;  %v318_v49 = vunpack.c.l.b16 %v300_v45 }
  0x97   :  { %v204_v8 = vrot.slane %v202_v58, 3  ;;  %v207_v9 = vrot.slane %v205_v59, 4  ;;  %v331_v58 = vld [vmem:[#allocation3 + $0x18] sm:$0x1] }
  0x99   :  { %v208_v18 = vor.u32 %v207_v9, %v204_v8  ;;  %v378_v9 = vld [vmem:[%s865_s3 + $0x8] sm:$0xf] }
  0x9a   :  { %v113_v54 = vpop.permute.xlu1 %112  ;;  %v167_v2 = vpop.permute.xlu0 %166 }
  0x9b   :  { %v128_v56 = vsel %vm125_vm6, %v613_v51, %v113_v54  ;;  %v130_v57 = vsel %vm125_vm6, %v102_v50, %v113_v54  ;;  %v176_v3 = vsel %vm131_vm7, %v172_v55, %v167_v2 }
  0x9c   :  { %v133_v60 = vsel %vm131_vm7, %v128_v56, %v122_v42  ;;  %v135_v61 = vsel %vm131_vm7, %v130_v57, %v124_v53  ;;  %v195_v10 = vshrl.u32 %v176_v3, 16  ;;  %v198_v11 = vshll.u32 %v176_v3, 16 }
  0x9d   :  { %v180_v62 = vshrl.u32 %v133_v60, 16  ;;  %v183_v63 = vshll.u32 %v133_v60, 16  ;;  %v187_v0 = vshrl.u32 %v135_v61, 16  ;;  %v190_v1 = vshll.u32 %v135_v61, 16 }
  0x9e   :  { %v197_v14 = vrot.slane %v195_v10, 3  ;;  %v200_v15 = vrot.slane %v198_v11, 4  ;;  %v388_v10 = vunpack.c.l.b16 %v378_v9 }
  0x9f   :  { %v182_v4 = vrot.slane %v180_v62, 3  ;;  %v185_v5 = vrot.slane %v183_v63, 4  ;;  %v189_v6 = vrot.slane %v187_v0, 3  ;;  %v192_v7 = vrot.slane %v190_v1, 4 }
  0xa0   :  { %v201_v17 = vor.u32 %v200_v15, %v197_v14  ;;  %v349_v63 = vunpack.c.l.b16 %v331_v58  ;;  %v390_v11 = vpack.c.b16 %v388_v10, %v388_v10  ;;  %v298_v14 = vld [vmem:[#allocation3] sm:$0x8] }
  0xa1   :  { %v193_v12 = vor.u32 %v192_v7, %v189_v6  ;;  %v186_v13 = vor.u32 %v185_v5, %v182_v4  ;;  %v303_v15 = vunpack.c.l.b16 %v298_v14 }
  0xa2   :  { %v209_v19 = vsel %vm179_vm8, %v201_v17, %v208_v18  ;;  %v329_v18 = vld [vmem:[#allocation3 + $0x10] sm:$0x8] }
  0xa3   :  { %v194_v16 = vsel %vm179_vm8, %v186_v13, %v193_v12  ;;  %544 = vmatmul.msk.bf16.vlgmr.msra.gmra.mxu3 %vm226_vm9, %v209_v19  ;;  %v396_v12 = vsel %vm372_vm2, %v390_v11, 0  ;;  %v568_v13 = vld [vmem:[%s865_s3] sm:$0xff]  ;;  %v334_v21 = vunpack.c.l.b16 %v329_v18  ;;  %s728_s3 = smov 48   ;;  %vm437_vm8 = vcmask 261120  }
  0xa4   :  { %543 = vmatmul.msk.bf16.vlgmr.msra.gmra.mxu0 %vm226_vm9, %v194_v16  ;;  %404 = vmatpush.bf16.msra.mxu1 %v396_v12  ;;  %vm439_vm9 = vcmask 392192  }
  0xa8   :  { %405 = vmatpush.bf16.msra.mxu1 %v568_v13 }
 0x121   :  { %v246_v23 = vpop.f32.mrf.mxu0 }
 0x122   :  { %v247_v24 = vadd.f32 %v603_v22, %v246_v23 }
 0x124   :  { %vm256_vm13 = vcmp.ge.f32.partialorder %v247_v24, 0.0  ;;  %v260_v27 = vmul.f32 0.01, %v247_v24 }
 0x126   :  { %v264_v28 = vsel %vm256_vm13, %v247_v24, %v260_v27  ;;  %v251_v30 = vpop.f32.mrf.mxu3 }
 0x127   :  { %269 = vst.msk [vmem:[#allocation4] sm:$0xff] %vm268_vm14, %v264_v28  ;;  %v252_v32 = vadd.f32 %v603_v22, %v251_v30 }
 0x129   :  { %v248_v29 = vpop.f32.mrf.mxu0  ;;  %vm258_vm0 = vcmp.ge.f32.partialorder %v252_v32, 0.0  ;;  %v262_v34 = vmul.f32 0.01, %v252_v32 }
 0x12a   :  { %v249_v31 = vadd.f32 %v603_v22, %v248_v29 }
 0x12b   :  { %v266_v36 = vsel %vm258_vm0, %v252_v32, %v262_v34 }
 0x12c   :  { %vm257_vm15 = vcmp.ge.f32.partialorder %v249_v31, 0.0  ;;  %v261_v33 = vmul.f32 0.01, %v249_v31  ;;  %271 = vst.msk [vmem:[#allocation4 + $0x10] sm:$0xff] %vm268_vm14, %v266_v36 }
 0x12e   :  { %v265_v35 = vsel %vm257_vm15, %v249_v31, %v261_v33  ;;  %v253_v37 = vpop.f32.mrf.mxu3 }
 0x12f   :  { %270 = vst.msk [vmem:[#allocation4 + $0x8] sm:$0xff] %vm268_vm14, %v265_v35  ;;  %v254_v38 = vadd.f32 %v603_v22, %v253_v37 }
 0x131   :  { %vm259_vm1 = vcmp.ge.f32.partialorder %v254_v38, 0.0  ;;  %v263_v39 = vmul.f32 0.01, %v254_v38 }
 0x133   :  { %v267_v43 = vsel %vm259_vm1, %v254_v38, %v263_v39  ;;  %v604_v38 = vld [vmem:[#allocation10] ss:$0 sm:$0xff] }
 0x134   :  { %272 = vst.msk [vmem:[#allocation4 + $0x18] sm:$0xff] %vm268_vm14, %v267_v43 }
 0x136   :  { %v273_v40 = vld [vmem:[#allocation4] ss:$2 sm:$0xff]  ;;  %v275_v41 = vld [vmem:[#allocation4 + $0x1] ss:$2 sm:$0xff] }
 0x137   :  { %v276_v42 = vmax.f32 %v273_v40, %v275_v41 }
 0x139   :  { %v277_v44 = vpack.c.bf16 %v276_v42, %v276_v42 }
 0x13b   :  { %279 = vst.msk [vmem:[#allocation3 + $0x4] sm:$0xf] %vm278_vm12, %v277_v44  ;;  %v281_v46 = vld [vmem:[#allocation4 + $0x10] ss:$2 sm:$0xff]  ;;  %v283_v47 = vld [vmem:[#allocation4 + $0x11] ss:$2 sm:$0xff] }
 0x13c   :  { %v284_v48 = vmax.f32 %v281_v46, %v283_v47 }
 0x13e   :  { %v285_v50 = vpack.c.bf16 %v284_v48, %v284_v48 }
 0x140   :  { %287 = vst.msk [vmem:[#allocation3 + $0x14] sm:$0xf] %vm278_vm12, %v285_v50 }
 0x142   :  { %v299_v51 = vld [vmem:[#allocation3 + $0x4] sm:$0xf] }
 0x143   :  { %v304_v52 = vunpack.c.l.b16 %v299_v51 }
 0x145   :  { %v319_v53 = vpack.c.b16 %v318_v49, %v304_v52  ;;  %v306_v54 = vpack.c.b16 %v304_v52, %v304_v52  ;;  %v305_v17 = vpack.c.b16 %v304_v52, %v303_v15 }
 0x147   :  { %v320_v55 = vrot.slane %v319_v53, 5  ;;  %v308_v56 = vshrl.u32 %v306_v54, 16  ;;  %v311_v57 = vshll.u32 %v306_v54, 16  ;;  %v330_v62 = vld [vmem:[#allocation3 + $0x14] sm:$0xf] }
 0x148   :  { %v335_v0 = vunpack.c.l.b16 %v330_v62  ;;  %v572_v62 = vld [vmem:[%s867_s5 + $0x18] sm:$0xff] }
 0x149   :  { %321 = vrot.lane.b32.xlu2 %v320_v55, %s726_s24  ;;  %v310_v59 = vrot.slane %v308_v56, 4  ;;  %v313_v60 = vrot.slane %v311_v57, 5  ;;  %511 = vmatpush.bf16.msra.mxu2 %v572_v62 }
 0x14a   :  { %v337_v1 = vpack.c.b16 %v335_v0, %v335_v0  ;;  %v350_v2 = vpack.c.b16 %v349_v63, %v335_v0  ;;  %v336_v25 = vpack.c.b16 %v335_v0, %v334_v21  ;;  %v571_v63 = vld [vmem:[%s867_s5 + $0x10] sm:$0xff]  ;;  %v570_v0 = vld [vmem:[%s867_s5 + $0x8] sm:$0xff] }
 0x14b   :  { %v314_v61 = vor.u32 %v313_v60, %v310_v59 }
 0x14c   :  { %v339_v3 = vshrl.u32 %v337_v1, 16  ;;  %v342_v4 = vshll.u32 %v337_v1, 16  ;;  %v351_v7 = vrot.slane %v350_v2, 5  ;;  %v569_v1 = vld [vmem:[%s867_s5] sm:$0xff] }
 0x14d   :  { %315 = vrot.lane.b32.xlu0 %v314_v61, %s727_s25  ;;  %512 = vmatpush.bf16.msra.mxu2 %v571_v63 }
 0x14e   :  { %v341_v5 = vrot.slane %v339_v3, 4  ;;  %v344_v6 = vrot.slane %v342_v4, 5 }
 0x150   :  { %v345_v8 = vor.u32 %v344_v6, %v341_v5 }
 0x151   :  { %513 = vmatpush.bf16.msra.mxu2 %v570_v0 }
 0x152   :  { %346 = vrot.lane.b32.xlu1 %v345_v8, %s727_s25 }
 0x155   :  { %352 = vrot.lane.b32.xlu0 %v351_v7, %s726_s24  ;;  %514 = vmatpush.bf16.msra.mxu2 %v569_v1 }
 0x1a3   :  { %v322_v20 = vpop.permute.xlu2 %321 }
 0x1bf   :  { %v316_v16 = vpop.permute.xlu0 %315 }
 0x1c0   :  { %v325_v19 = vsel %vm268_vm14, %v305_v17, %v316_v16 }
 0x1c1   :  { %v328_v22 = vsel %vm326_vm3, %v325_v19, %v322_v20  ;;  %v605_v20 = vld [vmem:[%s868_s6] ss:$0 sm:$0xff] }
 0x1c2   :  { %v359_v23 = vshrl.u32 %v328_v22, 16  ;;  %v362_v24 = vshll.u32 %v328_v22, 16 }
 0x1c4   :  { %v347_v27 = vpop.permute.xlu1 %346  ;;  %v361_v30 = vrot.slane %v359_v23, 3  ;;  %v364_v31 = vrot.slane %v362_v24, 4 }
 0x1c5   :  { %v356_v28 = vsel %vm268_vm14, %v336_v25, %v347_v27 }
 0x1c6   :  { %v365_v36 = vor.u32 %v364_v31, %v361_v30 }
 0x1c7   :  { %v353_v26 = vpop.permute.xlu0 %352 }
 0x1c8   :  { %v358_v29 = vsel %vm326_vm3, %v356_v28, %v353_v26 }
 0x1c9   :  { %v366_v32 = vshrl.u32 %v358_v29, 16  ;;  %v369_v34 = vshll.u32 %v358_v29, 16 }
 0x1cb   :  { %v368_v33 = vrot.slane %v366_v32, 7 }
 0x1cd   :  { %v371_v35 = vor.u32 %v369_v34, %v368_v33 }
 0x1cf   :  { %v375_v37 = vsel %vm372_vm2, %v365_v36, %v371_v35 }
 0x1d0   :  { %549 = vmatmul.msk.bf16.vlgmr.msra.gmra.mxu1 %vm392_vm4, %v375_v37 }
 0x24d   :  { %v407_v39 = vpop.f32.mrf.mxu1 }
 0x24e   :  { %v408_v40 = vadd.f32 %v604_v38, %v407_v39 }
 0x250   :  { %vm412_vm6 = vcmp.ge.f32.partialorder %v408_v40, 0.0  ;;  %v414_v41 = vmul.f32 0.01, %v408_v40 }
 0x252   :  { %v416_v42 = vsel %vm412_vm6, %v408_v40, %v414_v41 }
 0x253   :  { %418 = vst.msk [vmem:[#allocation4] sm:$0xff] %vm326_vm3, %v416_v42 }
 0x255   :  { %v409_v43 = vpop.f32.mrf.mxu1 }
 0x256   :  { %v410_v44 = vadd.f32 %v604_v38, %v409_v43 }
 0x258   :  { %vm413_vm7 = vcmp.ge.f32.partialorder %v410_v44, 0.0  ;;  %v415_v45 = vmul.f32 0.01, %v410_v44 }
 0x25a   :  { %v417_v46 = vsel %vm413_vm7, %v410_v44, %v415_v45  ;;  %v420_v47 = vld [vmem:[#allocation4] ss:$2 sm:$0xf]  ;;  %v421_v48 = vld [vmem:[#allocation4 + $0x1] ss:$2 sm:$0xf] }
 0x25b   :  { %419 = vst.msk [vmem:[#allocation4 + $0x8] sm:$0xff] %vm326_vm3, %v417_v46  ;;  %v422_v49 = vmax.f32 %v420_v47, %v421_v48 }
 0x25d   :  { %v432_v53 = vrot.slane %v422_v49, 3  ;;  %v428_v54 = vrot.slane %v422_v49, 2  ;;  %v424_v57 = vrot.slane %v422_v49, 1 }
 0x262   :  { %v442_v50 = vld [vmem:[#allocation4 + $0x8] ss:$2 sm:$0xf]  ;;  %v444_v51 = vld [vmem:[#allocation4 + $0x9] ss:$2 sm:$0xf] }
 0x263   :  { %v445_v52 = vmax.f32 %v442_v50, %v444_v51 }
 0x265   :  { %v455_v55 = vrot.slane %v445_v52, 3  ;;  %v451_v56 = vrot.slane %v445_v52, 2  ;;  %v447_v58 = vrot.slane %v445_v52, 1 }
 0x267   :  { %v598_v59 = vpack.i.bf16 %v432_v53, %v455_v55  ;;  %v593_v60 = vpack.i.bf16 %v428_v54, %v451_v56  ;;  %v588_v61 = vpack.i.bf16 %v424_v57, %v447_v58 }
 0x269   :  { %599 = vrot.lane.b32.xlu0 %v598_v59, %s728_s3  ;;  %594 = vrot.lane.b32.xlu2 %v593_v60, %s729_s30 }
 0x26a   :  { %589 = vrot.lane.b32.xlu1 %v588_v61, %s726_s24 }
 0x2c3   :  { %v595_v2 = vpop.permute.xlu2 %594 }
 0x2c4   :  { %v597_v7 = vunpack.i.h.bf16 %v595_v2  ;;  %v596_v8 = vunpack.i.l.bf16 %v595_v2 }
 0x2db   :  { %v600_v3 = vpop.permute.xlu0 %599 }
 0x2dc   :  { %v590_v4 = vpop.permute.xlu1 %589  ;;  %v601_v9 = vunpack.i.l.bf16 %v600_v3  ;;  %v602_v14 = vunpack.i.h.bf16 %v600_v3 }
 0x2dd   :  { %v592_v5 = vunpack.i.h.bf16 %v590_v4  ;;  %v591_v6 = vunpack.i.l.bf16 %v590_v4 }
 0x2df   :  { %v436_v10 = vsel %vm326_vm3, %v422_v49, %v592_v5  ;;  %v459_v11 = vsel %vm326_vm3, %v445_v52, %v591_v6 }
 0x2e0   :  { %v438_v12 = vsel %vm437_vm8, %v436_v10, %v597_v7  ;;  %v460_v13 = vsel %vm437_vm8, %v459_v11, %v596_v8 }
 0x2e1   :  { %v461_v15 = vsel %vm439_vm9, %v460_v13, %v601_v9  ;;  %v440_v17 = vsel %vm439_vm9, %v438_v12, %v602_v14 }
 0x2e2   :  { %v463_v16 = vrot.slane %v461_v15, 7 }
 0x2e4   :  { %v465_v18 = vsel %vm233_vm5, %v440_v17, %v463_v16 }
 0x2e5   :  { %v466_v19 = vpack.c.bf16 %v465_v18, %v465_v18 }
 0x2e7   :  { %566 = vmatmul.msk.bf16.vlgmr.msra.gmra.mxu2 %vm503_vm10, %v466_v19 }
 0x36a   :  { %v516_v21 = vpop.f32.mrf.mxu2 }
 0x36b   :  { %v517_v22 = vadd.f32 %v605_v20, %v516_v21 }
 0x36d   :  { %520 = vst [vmem:[#allocation11] sm:$0x3] %v517_v22 }
 0x36e   :  { %531 = dma.vmem_to_hbm [thread:$0]  %s527_s1, 32, %s529_s18, [#allocation7]  }
 0x372   :  { %v518_v23 = vpop.f32.mrf.mxu2 }
 0x373   :  { %714 = dma.done.wait [#allocation7], 32  }
 0x374   :  { %715 = vsyncadd [#allocation7], 4294967264 }
 0x375   :  { %536 = vsyncpa [#allocation6], 1 }
 0x376   :  { %537 = vsyncpa [#allocation9], 1 }
 0x377   :  { %538 = vsyncpa [#allocation7], 1 }

</bundles_post_ra>
